<compile_context>
chip_gen: v7x
topology: tpu7x:2x2x1
jax: 0.10.0
libtpu: 0.0.40
codegen_flags: <defaults>
</compile_context>

<pallas_src>
import functools

import jax
import jax.numpy as jnp
import numpy as np
from jax import lax
from jax.experimental import pallas as pl
from jax.experimental.pallas import tpu as pltpu

MARGIN = 2.0
EPS = 1e-6            # F.pairwise_distance default eps (added to the difference)
_LANE = 128
_SUBLANE = 8


def _round_up(x, m):
    return ((x + m - 1) // m) * m


def _default_num_shards():
    """Use 2 shards only when the device exposes two schedulable TensorCores."""
    try:
        kind = str(getattr(jax.devices()[0], "device_kind", "")).lower()
    except Exception:
        return 1
    return 2 if ("v7" in kind or "v5p" in kind or "v4" in kind) else 1


def _vmem_limit_bytes():
    """Half of physical VMEM, capped at 64 MiB (=> 32 MiB on v7x's 64 MiB VMEM)."""
    cap = 64 << 20
    try:
        info = pltpu.get_tpu_info()
        cap = int(getattr(info, "vmem_capacity_bytes", cap)) or cap
    except Exception:
        pass
    return int(min(cap // 2, 64 << 20))


def _contrastive_loss_kernel(o1_ref, o2_ref, lab_ref, out_ref, *, inv_d, inv_d2, margin):
    j = pl.program_id(1)                      # reduction axis over batch tiles

    @pl.when(j == 0)
    def _init():
        out_ref[...] = jnp.zeros_like(out_ref)

    o1 = o1_ref[...].astype(jnp.float32)      # (R, D)
    o2 = o2_ref[...].astype(jnp.float32)      # (R, D)

    diff = o1 - o2 + EPS
    sq = diff * diff                          # (R, D), non-negative

    # Per-row sums in a lane-dense (1, R) layout: ones(1, D) @ sq^T on the MXU
    # (same contraction pattern as q @ k^T).  sq is split into a bf16-exact high
    # part plus its residual so two native bf16 matmuls reproduce the f32 row sums
    # to ~2^-18 relative accuracy regardless of matmul precision mode.
    sq_hi = sq.astype(jnp.bfloat16)
    sq_lo = (sq - sq_hi.astype(jnp.float32)).astype(jnp.bfloat16)
    ones_row = jnp.ones((1, o1_ref.shape[1]), jnp.bfloat16)
    dims = (((1,), (1,)), ((), ()))
    sumsq = (
        lax.dot_general(ones_row, sq_hi, dims, preferred_element_type=jnp.float32)
        + lax.dot_general(ones_row, sq_lo, dims, preferred_element_type=jnp.float32)
    )[None]                                   # (1, 1, R), lane-dense

    lab = lab_ref[...]                        # (1, 1, R) float32, lane-dense

    pos = sumsq * inv_d2                      # d_norm^2 = sumsq / D^2 (no sqrt round-trip)
    d_norm = jnp.sqrt(sumsq) * inv_d          # EUP sqrt at full lane utilization
    hinge = jnp.maximum(margin - d_norm, 0.0)
    per_row = pos + lab * (hinge * hinge - pos)   # == (1-lab)*pos + lab*hinge^2

    out_ref[...] += per_row                   # resident per-shard accumulator


def contrastive_loss(output1, output2, label, *, margin=MARGIN, tile_rows=None,
                     num_shards=None):
    """output1, output2: (N, D); label: (N,). Returns scalar float32 loss."""
    n, d = output1.shape
    itemsize = jnp.dtype(output1.dtype).itemsize
    d_pad = _round_up(d, _LANE)

    vmem_limit = _vmem_limit_bytes()
    pipeline_budget = vmem_limit // 2

    # Lane-padded VMEM bytes per batch row held by the pipeline:
    #   2 data inputs x 2 buffers x round_up(D,128) x itemsize
    #   + label (1,1,R) block  : 8 sublanes x 4 B x 2 buffers
    #   + output (1,1,R) block : 8 sublanes x 4 B x 2 buffers
    bytes_per_row = 4 * d_pad * itemsize + 2 * (_SUBLANE * 4 * 2)

    n128 = _round_up(n, _LANE)
    if tile_rows is None:
        tile_rows = max(_LANE, (pipeline_budget // bytes_per_row) // _LANE * _LANE)
    tile_rows = max(_LANE, _round_up(int(tile_rows), _LANE))
    tile_rows = min(tile_rows, n128)

    tiles = pl.cdiv(n128, tile_rows)
    if num_shards is None:
        num_shards = _default_num_shards()
        if tiles < 2 * num_shards:            # too little work to split across cores
            num_shards = 1
    num_shards = max(1, min(int(num_shards), tiles))
    tiles_per_shard = pl.cdiv(tiles, num_shards)
    n_pad = num_shards * tiles_per_shard * tile_rows
    num_tiles = num_shards * tiles_per_shard

    o1, o2 = output1, output2
    lab = label.astype(jnp.float32)
    if n_pad != n:
        pad = n_pad - n
        # o1 pad = 0, o2 pad = EPS  =>  (o1 - o2 + EPS) == 0 exactly on pad rows (f32;
        # for bf16 inputs the residual is ~1e-17 per row, negligible).
        # label pad = 0             =>  pad rows contribute exactly 0 to the sum.
        o1 = jnp.pad(o1, ((0, pad), (0, 0)))
        o2 = jnp.pad(o2, ((0, pad), (0, 0)), constant_values=EPS)
        lab = jnp.pad(lab, ((0, pad),))
    lab = lab.reshape(num_tiles, 1, tile_rows)    # lane-major label blocks

    kernel = functools.partial(
        _contrastive_loss_kernel,
        inv_d=1.0 / float(d),
        inv_d2=1.0 / float(d * d),
        margin=float(margin),
    )

    per_row_sums = pl.pallas_call(
        kernel,
        out_shape=jax.ShapeDtypeStruct((num_shards, 1, tile_rows), jnp.float32),
        grid_spec=pltpu.PrefetchScalarGridSpec(
            num_scalar_prefetch=0,
            grid=(num_shards, tiles_per_shard),
            in_specs=[
                pl.BlockSpec((tile_rows, d), lambda i, j: (i * tiles_per_shard + j, 0)),
                pl.BlockSpec((tile_rows, d), lambda i, j: (i * tiles_per_shard + j, 0)),
                pl.BlockSpec((1, 1, tile_rows),
                             lambda i, j: (i * tiles_per_shard + j, 0, 0)),
            ],
            out_specs=pl.BlockSpec((1, 1, tile_rows), lambda i, j: (i, 0, 0)),
        ),
        compiler_params=pltpu.CompilerParams(
            dimension_semantics=("parallel", "arbitrary"),
            vmem_limit_bytes=vmem_limit,
        ),
        cost_estimate=pl.CostEstimate(
            flops=10 * n_pad * d,
            transcendentals=n_pad,
            bytes_accessed=2 * n_pad * d * itemsize + 8 * n_pad,
        ),
    )(o1, o2, lab)

    # Padded rows contribute exactly zero, so a plain sum over the per-shard
    # lane-dense accumulators recovers the loss sum; divide by the true batch size.
    return jnp.sum(per_row_sums) / jnp.float32(n)


def contrastive_loss_ref(output1, output2, label, margin=MARGIN):
    """Pure-JAX reference mirroring the PyTorch forward."""
    diff = output1.astype(jnp.float32) - output2.astype(jnp.float32) + EPS
    dist = jnp.sqrt(jnp.sum(diff * diff, axis=-1))
    dist = dist / float(output1.shape[1])
    lab = label.astype(jnp.float32)
    return jnp.mean(
        (1.0 - lab) * dist ** 2 + lab * jnp.maximum(margin - dist, 0.0) ** 2
    )


if __name__ == "__main__":
    key = jax.random.PRNGKey(0)
    k = jax.random.split(key, 9)

    def check(o1, o2, lab, **kw):
        out = jax.block_until_ready(contrastive_loss(o1, o2, lab, **kw))
        ref = jax.block_until_ready(contrastive_loss_ref(o1, o2, lab))
        np.testing.assert_allclose(np.asarray(out), np.asarray(ref),
                                   rtol=2e-5, atol=1e-6)

    # 1) Tiny siamese-embedding case (batch=8, hidden=128): single tile, single shard.
    N1, D1 = 8, 128
    check(jax.random.normal(k[0], (N1, D1), jnp.float32),
          jax.random.normal(k[1], (N1, D1), jnp.float32),
          (jax.random.uniform(k[2], (N1,)) > 0.5).astype(jnp.float32))

    # 2) Multi-tile accumulation + batch padding, non-multiple-of-128 feature dim.
    N2, D2 = 300, 96
    check(jax.random.normal(k[3], (N2, D2), jnp.float32),
          jax.random.normal(k[4], (N2, D2), jnp.float32),
          (jax.random.uniform(k[5], (N2,)) > 0.5).astype(jnp.float32),
          tile_rows=128)

    # 3) Explicit two-shard path (v7x-style two-TensorCore split; serial loop elsewhere).
    N3, D3 = 520, 256
    check(jax.random.normal(k[6], (N3, D3), jnp.float32),
          jax.random.normal(k[7], (N3, D3), jnp.float32),
          (jax.random.uniform(k[8], (N3,)) > 0.5).astype(jnp.float32),
          tile_rows=128, num_shards=2)

    print("KERNEL_OK")
</pallas_src>

<mosaic_0001>
module attributes {stable_mosaic.version = 11 : i64} {
  func.func @_contrastive_loss_kernel(%arg0: i32, %arg1: i32, %arg2: memref<128x128xf32, #tpu.memory_space<vmem>>, %arg3: memref<128x128xf32, #tpu.memory_space<vmem>>, %arg4: memref<1x1x128xf32, #tpu.memory_space<vmem>>, %arg5: memref<1x1x128xf32, #tpu.memory_space<vmem>>) attributes {dimension_semantics = [#tpu.dimension_semantics<parallel>, #tpu.dimension_semantics<arbitrary>], iteration_bounds = array<i64: 1, 1>, scalar_prefetch = 0 : i64, scratch_operands = 0 : i64, tpu.core_type = #tpu.core_type<tc>, window_params = [{transform_indices = @transform_0, window_bounds = array<i64: 128, 128>}, {transform_indices = @transform_1, window_bounds = array<i64: 128, 128>}, {transform_indices = @transform_2, window_bounds = array<i64: 1, 1, 128>}, {transform_indices = @transform_3, window_bounds = array<i64: 1, 1, 128>}]} {
    %c0_i32 = arith.constant 0 : i32
    %0 = arith.cmpi eq, %arg1, %c0_i32 : i32
    %1 = arith.extui %0 : i1 to i32
    %c0_i32_0 = arith.constant 0 : i32
    %2 = arith.cmpi ne, %1, %c0_i32_0 : i32
    scf.if %2 {
      %cst_20 = arith.constant 0.000000e+00 : f32
      %35 = vector.broadcast %cst_20 : f32 to vector<1x1x128xf32>
      %c0_21 = arith.constant 0 : index
      %c0_22 = arith.constant 0 : index
      %c0_23 = arith.constant 0 : index
      %36 = vector.load %arg5[%c0_21, %c0_22, %c0_23] : memref<1x1x128xf32, #tpu.memory_space<vmem>>, vector<1x1x128xf32>
      tpu.vector_store %arg5[%c0_21, %c0_22, %c0_23], %35 {strides = array<i32>} : memref<1x1x128xf32, #tpu.memory_space<vmem>>, vector<1x1x128xf32>,
    } else {
    }
    %c0 = arith.constant 0 : index
    %c0_1 = arith.constant 0 : index
    %3 = vector.load %arg2[%c0, %c0_1] : memref<128x128xf32, #tpu.memory_space<vmem>>, vector<128x128xf32>
    %c0_2 = arith.constant 0 : index
    %c0_3 = arith.constant 0 : index
    %4 = vector.load %arg3[%c0_2, %c0_3] : memref<128x128xf32, #tpu.memory_space<vmem>>, vector<128x128xf32>
    %5 = arith.subf %3, %4 : vector<128x128xf32>
    %cst = arith.constant 9.99999997E-7 : f32
    %6 = vector.broadcast %cst : f32 to vector<128x128xf32>
    %7 = arith.addf %5, %6 : vector<128x128xf32>
    %8 = arith.mulf %7, %7 : vector<128x128xf32>
    %9 = arith.truncf %8 : vector<128x128xf32> to vector<128x128xbf16>
    %10 = arith.extf %9 : vector<128x128xbf16> to vector<128x128xf32>
    %11 = arith.subf %8, %10 : vector<128x128xf32>
    %12 = arith.truncf %11 : vector<128x128xf32> to vector<128x128xbf16>
    %cst_4 = arith.constant 1.000000e+00 : bf16
    %13 = vector.broadcast %cst_4 : bf16 to vector<1x128xbf16>
    %cst_5 = arith.constant dense<0.000000e+00> : vector<1x128xf32>
    %14 = tpu.matmul %13, %9, %cst_5 {dimension_numbers = #tpu.dot_dimension_numbers<[1], [1], [0], [0], [0, 0, 1, 0], [], []>} : vector<1x128xbf16>, vector<128x128xbf16>, vector<1x128xf32> -> vector<1x128xf32>
    %cst_6 = arith.constant dense<0.000000e+00> : vector<1x128xf32>
    %15 = tpu.matmul %13, %12, %cst_6 {dimension_numbers = #tpu.dot_dimension_numbers<[1], [1], [0], [0], [0, 0, 1, 0], [], []>} : vector<1x128xbf16>, vector<128x128xbf16>, vector<1x128xf32> -> vector<1x128xf32>
    %16 = arith.addf %14, %15 : vector<1x128xf32>
    %17 = vector.shape_cast %16 : vector<1x128xf32> to vector<1x1x128xf32>
    %c0_7 = arith.constant 0 : index
    %c0_8 = arith.constant 0 : index
    %c0_9 = arith.constant 0 : index
    %18 = vector.load %arg4[%c0_7, %c0_8, %c0_9] : memref<1x1x128xf32, #tpu.memory_space<vmem>>, vector<1x1x128xf32>
    %cst_10 = arith.constant 6.10351563E-5 : f32
    %19 = vector.broadcast %cst_10 : f32 to vector<1x1x128xf32>
    %20 = arith.mulf %17, %19 : vector<1x1x128xf32>
    %21 = math.sqrt %17 : vector<1x1x128xf32>
    %cst_11 = arith.constant 7.812500e-03 : f32
    %22 = vector.broadcast %cst_11 : f32 to vector<1x1x128xf32>
    %23 = arith.mulf %21, %22 : vector<1x1x128xf32>
    %cst_12 = arith.constant 2.000000e+00 : f32
    %24 = vector.broadcast %cst_12 : f32 to vector<1x1x128xf32>
    %25 = arith.subf %24, %23 : vector<1x1x128xf32>
    %cst_13 = arith.constant 0.000000e+00 : f32
    %26 = vector.broadcast %cst_13 : f32 to vector<1x1x128xf32>
    %27 = arith.maximumf %25, %26 : vector<1x1x128xf32>
    %28 = arith.mulf %27, %27 : vector<1x1x128xf32>
    %29 = arith.subf %28, %20 : vector<1x1x128xf32>
    %30 = arith.mulf %18, %29 : vector<1x1x128xf32>
    %31 = arith.addf %20, %30 : vector<1x1x128xf32>
    %c0_14 = arith.constant 0 : index
    %c0_15 = arith.constant 0 : index
    %c0_16 = arith.constant 0 : index
    %32 = vector.load %arg5[%c0_14, %c0_15, %c0_16] : memref<1x1x128xf32, #tpu.memory_space<vmem>>, vector<1x1x128xf32>
    %33 = arith.addf %32, %31 : vector<1x1x128xf32>
    %c0_17 = arith.constant 0 : index
    %c0_18 = arith.constant 0 : index
    %c0_19 = arith.constant 0 : index
    %34 = vector.load %arg5[%c0_17, %c0_18, %c0_19] : memref<1x1x128xf32, #tpu.memory_space<vmem>>, vector<1x1x128xf32>
    tpu.vector_store %arg5[%c0_17, %c0_18, %c0_19], %33 {strides = array<i32>} : memref<1x1x128xf32, #tpu.memory_space<vmem>>, vector<1x1x128xf32>,
    return
  }
  func.func @transform_0(%arg0: i32, %arg1: i32) -> (i32, i32) {
    %c1_i32 = arith.constant 1 : i32
    %0 = arith.muli %arg0, %c1_i32 : i32
    %1 = arith.addi %0, %arg1 : i32
    %c0_i32 = arith.constant 0 : i32
    %c0_i32_0 = arith.constant 0 : i32
    return %1, %c0_i32 : i32, i32
  }
  func.func @transform_1(%arg0: i32, %arg1: i32) -> (i32, i32) {
    %c1_i32 = arith.constant 1 : i32
    %0 = arith.muli %arg0, %c1_i32 : i32
    %1 = arith.addi %0, %arg1 : i32
    %c0_i32 = arith.constant 0 : i32
    %c0_i32_0 = arith.constant 0 : i32
    return %1, %c0_i32 : i32, i32
  }
  func.func @transform_2(%arg0: i32, %arg1: i32) -> (i32, i32, i32) {
    %c1_i32 = arith.constant 1 : i32
    %0 = arith.muli %arg0, %c1_i32 : i32
    %1 = arith.addi %0, %arg1 : i32
    %c0_i32 = arith.constant 0 : i32
    %c0_i32_0 = arith.constant 0 : i32
    %c0_i32_1 = arith.constant 0 : i32
    return %1, %c0_i32, %c0_i32_0 : i32, i32, i32
  }
  func.func @transform_3(%arg0: i32, %arg1: i32) -> (i32, i32, i32) {
    %c0_i32 = arith.constant 0 : i32
    %c0_i32_0 = arith.constant 0 : i32
    %c0_i32_1 = arith.constant 0 : i32
    return %arg0, %c0_i32, %c0_i32_0 : i32, i32, i32
  }
}

</mosaic_0001>

<bundles_post_ra>
// kernel: tpu_custom_call.1
= control target key start
LH: loop header
LB: loop body
LE: loop exit
PB: predicated region body
PF: predicated region fallthrough
CT: control target
= control target key end

     0   :  { %8 = vsyncpa [#allocation3], 0  ;;  %s549_s0 = inlined_call_operand.hbm [shape: f32[128,128], index: 0, kind: input, shape index: {}]   ;;  %s550_s1 = inlined_call_operand.hbm [shape: f32[128,128], index: 1, kind: input, shape index: {}]   ;;  %s551_s2 = inlined_call_operand.vmem [shape: f32[1,1,128], index: 2, kind: input, shape index: {}]   ;;  %s552_s3 = inlined_call_operand.hbm [shape: f32[1,1,128], index: 3, kind: output, shape index: {}]  }
   0x1   :  { %9 = vsyncpa [#allocation6], 0 }
   0x2   :  { %10 = vsyncpa [#allocation4], 0  ;;  %s463_s12 = smov [#allocation2]   ;;  %s391_s16 = scalar_lea.hbm %s549_s0, 2048 }
   0x3   :  { %s20_s13 = sshll.u32 %s463_s12, 4  ;;  %p392_p0 = scmp.ne.s32.totalorder %s549_s0, %s391_s16  ;;  %s21_s13 = int_to_ptr.vmem [resolvable:$true] %s20_s13 }
   0x4   :  { %p395_p1 = scmp.lt.u32.totalorder %s391_s16, %s549_s0 }
   0x6   :  { %p397_p2 = pnand %p395_p1, %p392_p0 }
   0x8   :  { %400 = shalt.err (!%p397_p2)
}
   0x9   :  { %s401_s21 = scalar_lea.vmem %s21_s13, 2048  ;;  %p406_p4 = scmp.lt.s32.totalorder %s21_s13, %s21_s13 }
   0xa   :  { %p402_p3 = scmp.ne.s32.totalorder %s21_s13, %s401_s21  ;;  %p407_p5 = scmp.lt.s32.totalorder %s401_s21, %s401_s21 }
   0xc   :  { %p408_p6 = por %p407_p5, %p406_p4 }
   0xe   :  { %p409_p7 = pnand %p408_p6, %p402_p3 }
  0x10   :  { %412 = shalt.err (!%p409_p7)
}
  0x11   :  { %s464_s22 = smov 128   ;;  %s465_s23 = smov 8  }
  0x12   :  { %26 = dma.hbm_to_vmem [thread:$0]  %s549_s0, 2048, %s21_s13, [#allocation3], %s464_s22, %s464_s22, %s465_s23  }
  0x13   :  { %s466_s26 = smov [#allocation5]   ;;  %s413_s30 = scalar_lea.hbm %s550_s1, 2048 }
  0x14   :  { %s36_s27 = sshll.u32 %s466_s26, 4  ;;  %p414_p8 = scmp.ne.s32.totalorder %s550_s1, %s413_s30  ;;  %s37_s27 = int_to_ptr.vmem [resolvable:$true] %s36_s27 }
  0x15   :  { %p417_p9 = scmp.lt.u32.totalorder %s413_s30, %s550_s1 }
  0x17   :  { %p419_p10 = pnand %p417_p9, %p414_p8 }
  0x19   :  { %422 = shalt.err (!%p419_p10)
}
  0x1a   :  { %s423_s8 = scalar_lea.vmem %s37_s27, 2048  ;;  %p428_p12 = scmp.lt.s32.totalorder %s37_s27, %s37_s27 }
  0x1b   :  { %p424_p11 = scmp.ne.s32.totalorder %s37_s27, %s423_s8  ;;  %p429_p13 = scmp.lt.s32.totalorder %s423_s8, %s423_s8 }
  0x1d   :  { %p430_p0 = por %p429_p13, %p428_p12 }
  0x1f   :  { %p431_p1 = pnand %p430_p0, %p424_p11 }
  0x21   :  { %434 = shalt.err (!%p431_p1)
}
  0x22   :  { %42 = dma.hbm_to_vmem [thread:$0]  %s550_s1, 2048, %s37_s27, [#allocation6], %s464_s22, %s464_s22, %s465_s23  }
  0x23   :  { %457 = dma.done.wait [#allocation3], 2048  }
  0x24   :  { %458 = vsyncadd [#allocation3], 4294965248 }
  0x25   :  { %459 = dma.done.wait [#allocation6], 2048  }
  0x26   :  { %460 = vsyncadd [#allocation6], 4294965248  ;;  %v467_v0 = vmov 0.0   ;;  %vm468_vm0 = vmmov 0   ;;  %v76_v1 = vld [vmem:[#allocation2] sm:$0xff]  ;;  %v77_v2 = vld [vmem:[#allocation2 + $0x8] sm:$0xff] }
  0x27   :  { %360 = vmatprep.subr.bf16.mxu0 %v467_v0  ;;  %75 = vst [vmem:[#allocation7] sm:$0x1] %v467_v0  ;;  %340 = vmatprep.subr.bf16.mxu1 %v467_v0  ;;  %v92_v3 = vld [vmem:[#allocation5] sm:$0xff]  ;;  %v93_v4 = vld [vmem:[#allocation5 + $0x8] sm:$0xff]  ;;  %v78_v6 = vld [vmem:[#allocation2 + $0x10] sm:$0xff]  ;;  %s470_s11 = smov [#allocation7]  }
  0x28   :  { %376 = vmatprep.mubr.msk.bf16.mxu0 %vm468_vm0, %v467_v0  ;;  %356 = vmatprep.mubr.msk.bf16.mxu1 %vm468_vm0, %v467_v0  ;;  %v108_v5 = vsub.f32 %v76_v1, %v92_v3  ;;  %v79_v7 = vld [vmem:[#allocation2 + $0x18] sm:$0xff]  ;;  %v109_v8 = vsub.f32 %v77_v2, %v93_v4  ;;  %v94_v9 = vld [vmem:[#allocation5 + $0x10] sm:$0xff]  ;;  %v80_v11 = vld [vmem:[#allocation2 + $0x20] sm:$0xff]  ;;  %s309_s12 = sshll.u32 %s470_s11, 4  ;;  %s310_s12 = int_to_ptr.vmem [resolvable:$true] %s309_s12 }
  0x29   :  { %v95_v10 = vld [vmem:[#allocation5 + $0x18] sm:$0xff]  ;;  %v110_v13 = vsub.f32 %v78_v6, %v94_v9  ;;  %v81_v15 = vld [vmem:[#allocation2 + $0x28] sm:$0xff]  ;;  %v96_v16 = vld [vmem:[#allocation5 + $0x20] sm:$0xff]  ;;  %s435_s13 = scalar_lea.vmem %s310_s12, 16  ;;  %s439_s14 = scalar_lea.vmem %s310_s12, 32 }
  0x2a   :  { %v124_v12 = vadd.f32 1e-06, %v108_v5  ;;  %v111_v14 = vsub.f32 %v79_v7, %v95_v10  ;;  %v97_v17 = vld [vmem:[#allocation5 + $0x28] sm:$0xff]  ;;  %v125_v18 = vadd.f32 1e-06, %v109_v8  ;;  %v112_v19 = vsub.f32 %v80_v11, %v96_v16  ;;  %v82_v29 = vld [vmem:[#allocation2 + $0x30] sm:$0xff]  ;;  %p436_p2 = scmp.ne.s32.totalorder %s310_s12, %s435_s13  ;;  %p440_p3 = scmp.lt.s32.totalorder %s310_s12, %s310_s12 }
  0x2b   :  { %v113_v20 = vsub.f32 %v81_v15, %v97_v17  ;;  %v126_v22 = vadd.f32 1e-06, %v110_v13  ;;  %v83_v31 = vld [vmem:[#allocation2 + $0x38] sm:$0xff]  ;;  %v98_v32 = vld [vmem:[#allocation5 + $0x30] sm:$0xff]  ;;  %v84_v47 = vld [vmem:[#allocation2 + $0x40] sm:$0xff]  ;;  %p441_p4 = scmp.lt.s32.totalorder %s439_s14, %s435_s13 }
  0x2c   :  { %v140_v21 = vmul.f32 %v124_v12, %v124_v12  ;;  %v127_v23 = vadd.f32 1e-06, %v111_v14  ;;  %v141_v24 = vmul.f32 %v125_v18, %v125_v18  ;;  %v128_v27 = vadd.f32 1e-06, %v112_v19  ;;  %v99_v33 = vld [vmem:[#allocation5 + $0x38] sm:$0xff]  ;;  %v85_v52 = vld [vmem:[#allocation2 + $0x48] sm:$0xff] }
  0x2d   :  { %v142_v25 = vmul.f32 %v126_v22, %v126_v22  ;;  %v129_v28 = vadd.f32 1e-06, %v113_v20  ;;  %v114_v39 = vsub.f32 %v82_v29, %v98_v32  ;;  %v115_v40 = vsub.f32 %v83_v31, %v99_v33  ;;  %v100_v53 = vld [vmem:[#allocation5 + $0x40] sm:$0xff]  ;;  %v101_v54 = vld [vmem:[#allocation5 + $0x48] sm:$0xff]  ;;  %v86_v4 = vld [vmem:[#allocation2 + $0x50] sm:$0xff]  ;;  %p442_p5 = por %p441_p4, %p440_p3 }
  0x2e   :  { %v143_v26 = vmul.f32 %v127_v23, %v127_v23  ;;  %v156_v30 = vpack.c.bf16 %v141_v24, %v140_v21  ;;  %v144_v37 = vmul.f32 %v128_v27, %v128_v27  ;;  %v116_v56 = vsub.f32 %v84_v47, %v100_v53  ;;  %v102_v5 = vld [vmem:[#allocation5 + $0x50] sm:$0xff]  ;;  %v87_v6 = vld [vmem:[#allocation2 + $0x58] sm:$0xff]  ;;  %v88_v20 = vld [vmem:[#allocation2 + $0x60] sm:$0xff] }
  0x2f   :  { %v145_v38 = vmul.f32 %v129_v28, %v129_v28  ;;  %v130_v46 = vadd.f32 1e-06, %v114_v39  ;;  %v131_v51 = vadd.f32 1e-06, %v115_v40  ;;  %v117_v57 = vsub.f32 %v85_v52, %v101_v54  ;;  %v103_v7 = vld [vmem:[#allocation5 + $0x58] sm:$0xff]  ;;  %v89_v22 = vld [vmem:[#allocation2 + $0x68] sm:$0xff]  ;;  %p443_p6 = pnand %p442_p5, %p436_p2 }
  0x30   :  { %v157_v34 = vpack.c.bf16 %v143_v26, %v142_v25  ;;  %361 = vmatpush3.bf16.xpose.msra.mxu0 %v156_v30  ;;  %v164_v35 = vunpack.c.l.bf16 %v156_v30  ;;  %v165_v36 = vunpack.c.h.bf16 %v156_v30  ;;  %v132_v62 = vadd.f32 1e-06, %v116_v56  ;;  %v105_v23 = vld [vmem:[#allocation5 + $0x68] sm:$0xff]  ;;  %v90_v32 = vld [vmem:[#allocation2 + $0x70] sm:$0xff]  ;;  %v107_v39 = vld [vmem:[#allocation5 + $0x78] sm:$0xff] }
  0x31   :  { %362 = vmatprep.subr.bf16.mxu0 %v467_v0  ;;  %v158_v50 = vpack.c.bf16 %v145_v38, %v144_v37  ;;  %v146_v55 = vmul.f32 %v130_v46, %v130_v46  ;;  %v147_v61 = vmul.f32 %v131_v51, %v131_v51  ;;  %v133_v63 = vadd.f32 1e-06, %v117_v57 }
  0x32   :  { %v180_v41 = vsub.f32 %v140_v21, %v164_v35  ;;  %v181_v42 = vsub.f32 %v141_v24, %v165_v36  ;;  %v166_v43 = vunpack.c.l.bf16 %v157_v34  ;;  %v167_v44 = vunpack.c.h.bf16 %v157_v34  ;;  %v104_v21 = vld [vmem:[#allocation5 + $0x60] sm:$0xff] }
  0x33   :  { %v168_v59 = vunpack.c.l.bf16 %v158_v50  ;;  %v169_v60 = vunpack.c.h.bf16 %v158_v50  ;;  %v159_v3 = vpack.c.bf16 %v147_v61, %v146_v55  ;;  %v148_v8 = vmul.f32 %v132_v62, %v132_v62 }
  0x34   :  { %v196_v45 = vpack.c.bf16 %v181_v42, %v180_v41  ;;  %v182_v48 = vsub.f32 %v142_v25, %v166_v43  ;;  %v183_v49 = vsub.f32 %v143_v26, %v167_v44  ;;  %v149_v9 = vmul.f32 %v133_v63, %v133_v63 }
  0x35   :  { %v184_v1 = vsub.f32 %v144_v37, %v168_v59  ;;  %v185_v2 = vsub.f32 %v145_v38, %v169_v60  ;;  %v118_v10 = vsub.f32 %v86_v4, %v102_v5  ;;  %v170_v12 = vunpack.c.l.bf16 %v159_v3  ;;  %v91_v37 = vld [vmem:[#allocation2 + $0x78] sm:$0xff]  ;;  %v106_v38 = vld [vmem:[#allocation5 + $0x70] sm:$0xff] }
  0x36   :  { %341 = vmatpush3.bf16.xpose.msra.mxu1 %v196_v45  ;;  %v197_v58 = vpack.c.bf16 %v183_v49, %v182_v48  ;;  %v171_v13 = vunpack.c.h.bf16 %v159_v3  ;;  %v119_v14 = vsub.f32 %v87_v6, %v103_v7  ;;  %v160_v15 = vpack.c.bf16 %v149_v9, %v148_v8 }
  0x37   :  { %342 = vmatprep.subr.bf16.mxu1 %v467_v0  ;;  %v198_v11 = vpack.c.bf16 %v185_v2, %v184_v1  ;;  %v186_v16 = vsub.f32 %v146_v55, %v170_v12  ;;  %v134_v18 = vadd.f32 1e-06, %v118_v10  ;;  %v120_v26 = vsub.f32 %v88_v20, %v104_v21 }
  0x38   :  { %363 = vmatpush3.bf16.xpose.msra.mxu0 %v157_v34  ;;  %v187_v17 = vsub.f32 %v147_v61, %v171_v13  ;;  %v135_v19 = vadd.f32 1e-06, %v119_v14  ;;  %v172_v24 = vunpack.c.l.bf16 %v160_v15  ;;  %v173_v25 = vunpack.c.h.bf16 %v160_v15 }
  0x39   :  { %364 = vmatprep.subr.bf16.mxu0 %v467_v0  ;;  %v150_v28 = vmul.f32 %v134_v18, %v134_v18  ;;  %v121_v30 = vsub.f32 %v89_v22, %v105_v23  ;;  %v136_v31 = vadd.f32 1e-06, %v120_v26  ;;  %v122_v41 = vsub.f32 %v90_v32, %v106_v38  ;;  %v284_v22 = vld [vmem:[%s551_s2] sm:$0x1] }
  0x3a   :  { %v199_v27 = vpack.c.bf16 %v187_v17, %v186_v16  ;;  %v151_v29 = vmul.f32 %v135_v19, %v135_v19  ;;  %v188_v33 = vsub.f32 %v148_v8, %v172_v24  ;;  %v189_v34 = vsub.f32 %v149_v9, %v173_v25  ;;  %v300_v25 = vld [vmem:[#allocation7] sm:$0x1] }
  0x3b   :  { %v137_v36 = vadd.f32 1e-06, %v121_v30  ;;  %v152_v40 = vmul.f32 %v136_v31, %v136_v31  ;;  %v123_v42 = vsub.f32 %v91_v37, %v107_v39  ;;  %v138_v47 = vadd.f32 1e-06, %v122_v41 }
  0x3c   :  { %v161_v35 = vpack.c.bf16 %v151_v29, %v150_v28  ;;  %v200_v43 = vpack.c.bf16 %v189_v34, %v188_v33 }
  0x3d   :  { %v153_v46 = vmul.f32 %v137_v36, %v137_v36  ;;  %v139_v51 = vadd.f32 1e-06, %v123_v42  ;;  %v154_v52 = vmul.f32 %v138_v47, %v138_v47 }
  0x3e   :  { %343 = vmatpush3.bf16.xpose.msra.mxu1 %v197_v58  ;;  %v174_v44 = vunpack.c.l.bf16 %v161_v35  ;;  %v175_v45 = vunpack.c.h.bf16 %v161_v35 }
  0x3f   :  { %344 = vmatprep.subr.bf16.mxu1 %v467_v0  ;;  %v155_v56 = vmul.f32 %v139_v51, %v139_v51 }
  0x40   :  { %365 = vmatpush3.bf16.xpose.msra.mxu0 %v158_v50  ;;  %v190_v48 = vsub.f32 %v150_v28, %v174_v44  ;;  %v191_v49 = vsub.f32 %v151_v29, %v175_v45  ;;  %v162_v50 = vpack.c.bf16 %v153_v46, %v152_v40 }
  0x41   :  { %366 = vmatprep.subr.bf16.mxu0 %v467_v0  ;;  %v163_v59 = vpack.c.bf16 %v155_v56, %v154_v52 }
  0x42   :  { %v201_v53 = vpack.c.bf16 %v191_v49, %v190_v48  ;;  %v176_v54 = vunpack.c.l.bf16 %v162_v50  ;;  %v177_v55 = vunpack.c.h.bf16 %v162_v50 }
  0x43   :  { %v178_v61 = vunpack.c.l.bf16 %v163_v59  ;;  %v179_v62 = vunpack.c.h.bf16 %v163_v59 }
  0x44   :  { %v192_v57 = vsub.f32 %v152_v40, %v176_v54  ;;  %v193_v58 = vsub.f32 %v153_v46, %v177_v55 }
  0x45   :  { %v194_v63 = vsub.f32 %v154_v52, %v178_v61  ;;  %v195_v1 = vsub.f32 %v155_v56, %v179_v62 }
  0x46   :  { %345 = vmatpush3.bf16.xpose.msra.mxu1 %v198_v11  ;;  %v202_v60 = vpack.c.bf16 %v193_v58, %v192_v57 }
  0x47   :  { %346 = vmatprep.subr.bf16.mxu1 %v467_v0  ;;  %v203_v2 = vpack.c.bf16 %v195_v1, %v194_v63 }
  0x48   :  { %367 = vmatpush3.bf16.xpose.msra.mxu0 %v159_v3  ;;  %v469_v3 = vmov 1065369472  }
  0x49   :  { %368 = vmatprep.subr.bf16.mxu0 %v467_v0 }
  0x4e   :  { %347 = vmatpush3.bf16.xpose.msra.mxu1 %v199_v27 }
  0x4f   :  { %348 = vmatprep.subr.bf16.mxu1 %v467_v0 }
  0x50   :  { %369 = vmatpush3.bf16.xpose.msra.mxu0 %v160_v15 }
  0x51   :  { %370 = vmatprep.subr.bf16.mxu0 %v467_v0 }
  0x56   :  { %349 = vmatpush3.bf16.xpose.msra.mxu1 %v200_v43 }
  0x57   :  { %350 = vmatprep.subr.bf16.mxu1 %v467_v0 }
  0x58   :  { %371 = vmatpush3.bf16.xpose.msra.mxu0 %v161_v35 }
  0x59   :  { %372 = vmatprep.subr.bf16.mxu0 %v467_v0 }
  0x5e   :  { %351 = vmatpush3.bf16.xpose.msra.mxu1 %v201_v53 }
  0x5f   :  { %352 = vmatprep.subr.bf16.mxu1 %v467_v0 }
  0x60   :  { %373 = vmatpush3.bf16.xpose.msra.mxu0 %v162_v50 }
  0x61   :  { %374 = vmatprep.subr.bf16.mxu0 %v467_v0 }
  0x66   :  { %353 = vmatpush3.bf16.xpose.msra.mxu1 %v202_v60 }
  0x67   :  { %354 = vmatprep.subr.bf16.mxu1 %v467_v0 }
  0x68   :  { %375 = vmatpush3.bf16.xpose.msra.mxu0 %v163_v59 }
  0x6e   :  { %355 = vmatpush3.bf16.xpose.msra.mxu1 %v203_v2 }
  0x6f   :  { %377 = vmatmul.mubr.bf16.vlgmr.msra.gmra.mrb[0].mxu0 %v469_v3 }
  0x75   :  { %357 = vmatmul.mubr.bf16.vlgmr.msra.gmra.mrb[0].mxu1 %v469_v3 }
 0x142   :  { %v278_v4 = vpop.f32.mrb[0].mxu0 }
 0x143   :  { %v378_v5 = vpop.f32.mrb[1].mxu0 }
 0x144   :  { %v281_v6 = vpop.f32.mrb[2].mxu0 }
 0x145   :  { %v379_v7 = vpop.f32.mrb[3].mxu0 }
 0x148   :  { %v238_v8 = vpop.f32.mrb[0].mxu1 }
 0x149   :  { %v279_v9 = vadd.f32 %v278_v4, %v238_v8  ;;  %v358_v10 = vpop.f32.mrb[1].mxu1 }
 0x14a   :  { %v241_v11 = vpop.f32.mrb[2].mxu1 }
 0x14b   :  { %389 = vrsqrt.f32 %v279_v9  ;;  %v359_v12 = vpop.f32.mrb[3].mxu1  ;;  %vm288_vm1 = vcmp.eq.f32.partialorder %v279_v9, inf  ;;  %v291_v0 = vand.u32 2147483648, %v279_v9  ;;  %vm290_vm2 = vcmp.eq.f32.partialorder %v279_v9, 0.0 }
 0x14c   :  { %v285_v20 = vmul.f32 6.1035156e-05, %v279_v9 }
 0x155   :  { %v390_v13 = vpop.eup %389 }
 0x156   :  { %v287_v14 = vmul.f32 %v390_v13, %v279_v9 }
 0x158   :  { %v289_v15 = vsel %vm288_vm1, %v279_v9, %v287_v14 }
 0x159   :  { %v292_v16 = vsel %vm290_vm2, %v291_v0, %v289_v15 }
 0x15a   :  { %v293_v17 = vmul.f32 0.0078125, %v292_v16 }
 0x15c   :  { %v294_v18 = vsub.f32 2.0, %v293_v17 }
 0x15e   :  { %v295_v19 = vmax.f32 %v294_v18, 0.0 }
 0x160   :  { %v296_v21 = vmul.f32 %v295_v19, %v295_v19 }
 0x162   :  { %v297_v23 = vsub.f32 %v296_v21, %v285_v20 }
 0x164   :  { %v298_v24 = vmul.f32 %v297_v23, %v284_v22 }
 0x166   :  { %v299_v26 = vadd.f32 %v298_v24, %v285_v20 }
 0x168   :  { %v301_v27 = vadd.f32 %v300_v25, %v299_v26 }
 0x16a   :  { %302 = vst [vmem:[#allocation7] sm:$0x1] %v301_v27 }
 0x16b   :  { %446 = shalt.err (!%p443_p6)
}
 0x16c   :  { %s447_s2 = scalar_lea.hbm %s552_s3, 16 }
 0x16d   :  { %p448_p7 = scmp.ne.s32.totalorder %s552_s3, %s447_s2  ;;  %p451_p8 = scmp.lt.u32.totalorder %s447_s2, %s552_s3 }
 0x16f   :  { %p453_p9 = pnand %p451_p8, %p448_p7 }
 0x171   :  { %456 = shalt.err (!%p453_p9)
}
 0x172   :  { %312 = dma.vmem_to_hbm [thread:$0]  %s310_s12, 16, %s552_s3, [#allocation4]  }
 0x173   :  { %461 = dma.done.wait [#allocation4], 16  }
 0x174   :  { %462 = vsyncadd [#allocation4], 4294967280 }
 0x175   :  { %316 = vsyncpa [#allocation3], 1 }
 0x176   :  { %317 = vsyncpa [#allocation6], 1 }
 0x177   :  { %318 = vsyncpa [#allocation4], 1 }

</bundles_post_ra>
